<compile_context>
chip_gen: v5e
topology: v5e:2x2
jax: 0.10.0
libtpu: 0.0.40
codegen_flags: <defaults>
</compile_context>

<pallas_src>
import jax
import jax.numpy as jnp
from jax.experimental import pallas as pl
from jax.experimental.pallas import tpu as pltpu


# Largest tile first; 512 is safe on every generation (v7x included):
# per step it is 1 MiB in + 1 MiB out (f32), 4 MiB with double buffering.
_TILE_CANDIDATES = (512, 256, 128)


def _cat_transpose_tiled_kernel(x_ref, o_ref):
    """Grid is (nb, 2*nb).  Column blocks j < nb are the 'x' half (copy),
    column blocks j >= nb are the 'x.T' half (transpose of tile (j-nb, i))."""
    half = pl.num_programs(1) // 2
    j = pl.program_id(1)

    @pl.when(j < half)
    def _copy():
        o_ref[...] = x_ref[...]

    @pl.when(j >= half)
    def _transpose():
        o_ref[...] = jnp.transpose(x_ref[...], (1, 0))


def _cat_transpose_tiled(x2, tile):
    """x2 is square (n, n) with n % tile == 0; returns (n, 2n)."""
    n = x2.shape[0]
    nb = n // tile

    def x_index_map(i, j):
        # Left half (j < nb): load x tile (i, j).
        # Right half (j >= nb): load x tile (j - nb, i) and transpose it.
        right = j >= nb
        row = jnp.where(right, j - nb, i)
        col = jnp.where(right, i, j)
        return row, col

    return pl.pallas_call(
        _cat_transpose_tiled_kernel,
        out_shape=jax.ShapeDtypeStruct((n, 2 * n), x2.dtype),
        grid=(nb, 2 * nb),
        in_specs=[pl.BlockSpec((tile, tile), x_index_map)],
        out_specs=pl.BlockSpec((tile, tile), lambda i, j: (i, j)),
        compiler_params=pltpu.CompilerParams(
            dimension_semantics=("parallel", "parallel"),
        ),
    )(x2)


def cat_with_transpose(x):
    """Reproduces Model.forward: flatten(1) then cat((x, x.T), dim=1)."""
    # flatten(1) — pure reshape, done in plain JAX.
    x2 = x.reshape(x.shape[0], -1)
    n, m = x2.shape
    assert n == m, "cat((x, x.t()), dim=1) requires a square flattened input"

    tile = next((t for t in _TILE_CANDIDATES if n % t == 0), None)
    if tile is not None:
        return _cat_transpose_tiled(x2, tile)

    # Ragged N: pad to a lane-aligned square, run the tiled kernel, reassemble.
    # TODO(synk): the ragged-N reassembly concat runs in XLA outside the kernel.
    n_pad = ((n + 127) // 128) * 128
    tile = next(t for t in _TILE_CANDIDATES if n_pad % t == 0)
    xp = jnp.zeros((n_pad, n_pad), x2.dtype).at[:n, :n].set(x2)
    outp = _cat_transpose_tiled(xp, tile)
    return jnp.concatenate([outp[:n, :n], outp[:n, n_pad:n_pad + n]], axis=1)


if __name__ == "__main__":
    key = jax.random.PRNGKey(0)
    # Small-ish input that exercises flatten(1) and the tiled path:
    # (256, 16, 16) -> flattened to a square (256, 256).
    x = jax.random.normal(key, (256, 16, 16), dtype=jnp.float32)

    out = cat_with_transpose(x)
    out = jax.block_until_ready(out)

    # Reference in plain JAX.
    x2 = x.reshape(x.shape[0], -1)
    ref = jnp.concatenate([x2, x2.T], axis=1)

    assert out.shape == (256, 512)
    assert jnp.allclose(out, ref), "mismatch vs reference"

    print("KERNEL_OK")
</pallas_src>

<mosaic_0001>
module attributes {stable_mosaic.version = 11 : i64} {
  func.func @_cat_transpose_tiled_kernel(%arg0: i32, %arg1: i32, %arg2: memref<256x256xf32, #tpu.memory_space<vmem>>, %arg3: memref<256x256xf32, #tpu.memory_space<vmem>>) attributes {dimension_semantics = [#tpu.dimension_semantics<parallel>, #tpu.dimension_semantics<parallel>], iteration_bounds = array<i64: 1, 2>, scalar_prefetch = 0 : i64, scratch_operands = 0 : i64, tpu.core_type = #tpu.core_type<tc>, window_params = [{transform_indices = @transform_0, window_bounds = array<i64: 256, 256>}, {transform_indices = @transform_1, window_bounds = array<i64: 256, 256>}]} {
    %c1_i32 = arith.constant 1 : i32
    %0 = arith.cmpi slt, %arg1, %c1_i32 : i32
    %1 = arith.extui %0 : i1 to i32
    %c0_i32 = arith.constant 0 : i32
    %2 = arith.cmpi ne, %1, %c0_i32 : i32
    scf.if %2 {
      %c0 = arith.constant 0 : index
      %c0_2 = arith.constant 0 : index
      %6 = vector.load %arg2[%c0, %c0_2] : memref<256x256xf32, #tpu.memory_space<vmem>>, vector<256x256xf32>
      %c0_3 = arith.constant 0 : index
      %c0_4 = arith.constant 0 : index
      %7 = vector.load %arg3[%c0_3, %c0_4] : memref<256x256xf32, #tpu.memory_space<vmem>>, vector<256x256xf32>
      tpu.vector_store %arg3[%c0_3, %c0_4], %6 {strides = array<i32>} : memref<256x256xf32, #tpu.memory_space<vmem>>, vector<256x256xf32>,
    } else {
    }
    %c1_i32_0 = arith.constant 1 : i32
    %3 = arith.cmpi sge, %arg1, %c1_i32_0 : i32
    %4 = arith.extui %3 : i1 to i32
    %c0_i32_1 = arith.constant 0 : i32
    %5 = arith.cmpi ne, %4, %c0_i32_1 : i32
    scf.if %5 {
      %c0 = arith.constant 0 : index
      %c0_2 = arith.constant 0 : index
      %6 = vector.load %arg2[%c0, %c0_2] : memref<256x256xf32, #tpu.memory_space<vmem>>, vector<256x256xf32>
      %7 = tpu.transpose %6, [1, 0] : vector<256x256xf32> -> vector<256x256xf32>
      %c0_3 = arith.constant 0 : index
      %c0_4 = arith.constant 0 : index
      %8 = vector.load %arg3[%c0_3, %c0_4] : memref<256x256xf32, #tpu.memory_space<vmem>>, vector<256x256xf32>
      tpu.vector_store %arg3[%c0_3, %c0_4], %7 {strides = array<i32>} : memref<256x256xf32, #tpu.memory_space<vmem>>, vector<256x256xf32>,
    } else {
    }
    return
  }
  func.func @transform_0(%arg0: i32, %arg1: i32) -> (i32, i32) {
    %c1_i32 = arith.constant 1 : i32
    %0 = arith.cmpi sge, %arg1, %c1_i32 : i32
    %c1_i32_0 = arith.constant 1 : i32
    %1 = arith.subi %arg1, %c1_i32_0 : i32
    %2 = arith.select %0, %1, %arg0 : i32
    %3 = arith.select %0, %arg0, %arg1 : i32
    %c0_i32 = arith.constant 0 : i32
    return %2, %3 : i32, i32
  }
  func.func @transform_1(%arg0: i32, %arg1: i32) -> (i32, i32) {
    %c0_i32 = arith.constant 0 : i32
    return %arg0, %arg1 : i32, i32
  }
}

</mosaic_0001>

<bundles_post_ra>
// kernel: tpu_custom_call.1
= control target key start
LH: loop header
LB: loop body
LE: loop exit
PB: predicated region body
PF: predicated region fallthrough
CT: control target
= control target key end

     0   :  { %6 = vsyncpa [#allocation3], 0  ;;  %s1395_s0 = inlined_call_operand.hbm [shape: f32[256,256], index: 0, kind: input, shape index: {}]   ;;  %s1396_s1 = inlined_call_operand.hbm [shape: f32[256,512], index: 1, kind: output, shape index: {}]  }
   0x1   :  { %8 = vsyncpa [#allocation3 + $0x1], 0 }
   0x2   :  { %9 = vsyncpa [#allocation4], 0 }
   0x3   :  { %11 = vsyncpa [#allocation4 + $0x1], 0  ;;  %s942_s6 = smov 0   ;;  %s944_s7 = smov 0  }
   0x4   :  { %s946_s8 = smov 0   ;;  %s948_s9 = smov 0  }
   0x5   :  { %s950_s10 = smov 0   ;;  %s952_s11 = smov 0  }
   0x6   :  { %s954_s12 = smov 0   ;;  %s956_s13 = smov 0  }
   0x7   :  { %s958_s14 = smov 0  }
   0x8 LB: > { %s674_s15 = sadd.s32 4294967295, %s925_s14   ;;  %s675_s16 = sadd.s32 4294967294, %s925_s14   ;;  %s925_s14 = sphi %s958_s14, %s17_s14   ;;  %s921_s13 = sphi %s956_s13, %s1412_s13   ;;  %s917_s12 = sphi %s954_s12, %s1411_s12   ;;  %s913_s11 = sphi %s952_s11, %s1410_s11   ;;  %s909_s10 = sphi %s950_s10, %s1409_s10   ;;  %s905_s9 = sphi %s948_s9, %s1408_s9   ;;  %s901_s8 = sphi %s946_s8, %s1407_s8   ;;  %s897_s7 = sphi %s944_s7, %s1406_s7   ;;  %s893_s6 = sphi %s942_s6, %s1405_s6  }
   0x9   : > { %s26_s17 = sadd.s32 1, %s921_s13  ;;  %p33_p0 = scmp.ge.s32.totalorder %s921_s13, 1 }
   0xa   : > { %p27_p1 = scmp.ge.s32.totalorder %s26_s17, 2  ;;  %s676_s18 = sadd.s32 4294967295, %s921_s13 }
   0xb   : > { %s1414_s18 = smov (!%p33_p0, %s676_s18), 0  ;;  %s46_s21 = sadd.s32 1, %s913_s11 }
   0xc   : > { %s1416_s17 = smov (%p27_p1, %s26_s17), 0  ;;  %p53_p3 = scmp.ne.s32.totalorder %s913_s11, %s909_s10 }
   0xd   : > { %1398 = sst [smem:[#allocation8_spill]] %s1416_s17  ;;  %p37_p2 = scmp.ge.s32.totalorder %s1416_s17, 1 }
   0xe   : > { %s997_s19 = scalar_select %p33_p0, 0, %s921_s13 }
   0xf   : > { %s677_s20 = sadd.s32 4294967295, %s1416_s17  ;;  %p54_p4 = scmp.eq.s32.totalorder %s925_s14, 0 }
  0x10   : > { %s1418_s20 = smov (!%p37_p2, %s677_s20), 0  ;;  %p59_p5 = scmp.ne.s32.totalorder %s909_s10, %s905_s9 }
  0x11   : > { %s40_s22 = scalar_select %p37_p2, 0, %s1416_s17 }
  0x12   : > { %s41_s23 = ssub.s32 %s1414_s18, %s1418_s20  ;;  %p1010_p6 = por %p54_p4, %p53_p3 }
  0x13   : > { %s42_s24 = ssub.s32 %s997_s19, %s40_s22  ;;  %p60_p8 = scmp.eq.s32.totalorder %s674_s15, 0 }
  0x14   : > { %s43_s25 = sor.u32 %s42_s24, %s41_s23  ;;  %s70_s27 = ssub.s32 %s921_s13, %s1416_s17 }
  0x15   : > { %p44_p7 = scmp.eq.s32.totalorder %s43_s25, 0  ;;  %s74_s28 = sadd.s32 1, %s901_s8 }
  0x16   : > { %p1022_p9 = por %p60_p8, %p59_p5  ;;  %p72_p10 = scmp.eq.s32.totalorder %s70_s27, 0 }
  0x17   : > { %s1020_s29 = scalar_select %p44_p7, %s913_s11, %s46_s21  }
  0x18   : > { %p84_p11 = scmp.ne.s32.totalorder %s901_s8, %s897_s7  ;;  %p85_p12 = scmp.eq.s32.totalorder %s674_s15, 1 }
  0x19   : > { %s1031_s2 = scalar_select %p72_p10, %s901_s8, %s74_s28  }
  0x1a   : > { %p1033_p13 = por %p85_p12, %p84_p11  ;;  %p90_p0 = scmp.ne.s32.totalorder %s897_s7, %s893_s6 }
  0x1b   : > { %p91_p1 = scmp.eq.s32.totalorder %s675_s16, 1  ;;  %p679_p2 = scmp.ge.s32.totalorder %s925_s14, 2 }
  0x1c   : > { %p710_p3 = scmp.lt.s32.totalorder %s925_s14, 2  ;;  %s111_s4 = sand.u32 1, %s913_s11  }
  0x1d   : > { %p1044_p4 = por %p91_p1, %p90_p0  ;;  %s680_s9 = sshll.u32 %s111_s4, 9 }
  0x1e   : > { %s683_s15 = sshll.u32 %s997_s19, 1  ;;  %s696_s20 = sshll.u32 %s1414_s18, 6 }
  0x1f   : > { %s125_s21 = sadd.s32 %s696_s20, %s683_s15  ;;  %s115_s22 = scalar_lea.vmem [#allocation2], %s680_s9 }
  0x20   : > { %s1050_s23 = sshll.u32 %s115_s22, 4  ;;  %s685_s24 = sshll.u32 %s125_s21, 3  ;;  %s131_s23 = int_to_ptr.vmem [resolvable:$true] %s1050_s23 }
  0x21   : > { %s127_s27 = scalar_lea.hbm %s1395_s0, %s685_s24  ;;  %p1058_p5 = pnand %p710_p3, %p1010_p6 }
  0x22   : > { %s128_s17 = sshll.u32 %s127_s27, 4  ;;  %p686_p7 = scmp.ge.s32.totalorder %s925_s14, 1  ;;  %s129_s17 = int_to_ptr.hbm [resolvable:$true] %s128_s17 }
  0x23   : > { %s112_s18 = scalar_lea.sflag [#allocation3], %s111_s4  ;;  %s789_s19 = sshra.s32 %s129_s17, 4  ;;  %s790_s19 = int_to_ptr.hbm [resolvable:$true] %s789_s19 }
  0x24   : > { %s791_s9 = scalar_lea.hbm %s790_s19, 512  ;;  %p793_p10 = pneg %p1058_p5 }
  0x25   : > { %p792_p8 = scmp.ne.s32.totalorder %s790_s19, %s791_s9  ;;  %s796_s26 = scalar_lea.hbm %s1395_s0, 512 }
  0x26   : > { %p797_p6 = scmp.lt.s32.totalorder %s790_s19, %s1395_s0  ;;  %p798_p0 = scmp.lt.s32.totalorder %s796_s26, %s791_s9 }
  0x27   : > { %p794_p11 = pnand %p793_p10, %p792_p8 }
  0x28   : > { %p799_p1 = por %p798_p0, %p797_p6 }
  0x29   : > { %p795_p12 = pneg %p794_p11 }
  0x2b   : > { %p800_p3 = pnand %p799_p1, %p795_p12 }
  0x2d   : > { %803 = shalt.err (!%p800_p3)
}
  0x2e   : > { %s927_s4 = smov 256   ;;  %s928_s24 = smov 16  }
  0x2f   : > { %705 = dma.hbm_to_vmem [thread:$0]  (!%p1058_p5), %s129_s17, 8192, %s131_s23, %s112_s18, %s927_s4, %s927_s4, %s928_s24  }
  0x30   : > { %p138_p8 = scmp.lt.s32.totalorder %s925_s14, 3 }
  0x32   : > { %p139_p10 = pnand %p686_p7, %p138_p8 }
  0x33   : > { %s144_s25 = sand.u32 (!%p139_p10), 1, %s909_s10  }
  0x34   : > { %142 = sbr.rel (%p139_p10) target bundleno = 569 (0x239), region = 24  ;;  %s687_s16 = sshll.u32 (!%p139_p10), %s144_s25, 9 }
  0x35   : > { %s145_s27 = scalar_lea.sflag (!%p139_p10), [#allocation3], %s144_s25  ;;  %s1077_s19 = scalar_lea.vmem (!%p139_p10), [#allocation2], %s687_s16 }
  0x39   : > { %884 = dma.done.wait (%p1022_p9), %s145_s27, 8192  }
  0x3a   : > { %886 = vsyncadd (%p1022_p9), %s145_s27, 4294959104  ;;  %s165_s28 = sand.u32 1, %s897_s7   ;;  %p689_p5 = scmp.ge.s32.totalorder %s917_s12, 1 }
  0x3b   : > { %s688_s17 = sshll.u32 %s165_s28, 9 }
  0x3c   : > { %s1086_s23 = scalar_lea.vmem [#allocation5], %s688_s17  ;;  %179 = sbr.rel (%p689_p5) target bundleno = 130 (0x82), region = 32 }
  0x41   : > { %v180_v0 = vld [vmem:[%s1077_s19] sm:$0xff]  ;;  %v181_v1 = vld [vmem:[%s1077_s19 + $0x8] sm:$0xff]  ;;  %v182_v2 = vld [vmem:[%s1077_s19 + $0x10] sm:$0xff] }
  0x42   : > { %244 = vst [vmem:[%s1086_s23] sm:$0xff] %v180_v0  ;;  %v183_v3 = vld [vmem:[%s1077_s19 + $0x18] sm:$0xff]  ;;  %v184_v4 = vld [vmem:[%s1077_s19 + $0x20] sm:$0xff]  ;;  %v185_v5 = vld [vmem:[%s1077_s19 + $0x28] sm:$0xff] }
  0x43   : > { %245 = vst [vmem:[%s1086_s23 + $0x8] sm:$0xff] %v181_v1  ;;  %v186_v6 = vld [vmem:[%s1077_s19 + $0x30] sm:$0xff]  ;;  %v187_v7 = vld [vmem:[%s1077_s19 + $0x38] sm:$0xff]  ;;  %v188_v8 = vld [vmem:[%s1077_s19 + $0x40] sm:$0xff] }
  0x44   : > { %246 = vst [vmem:[%s1086_s23 + $0x10] sm:$0xff] %v182_v2  ;;  %v189_v9 = vld [vmem:[%s1077_s19 + $0x48] sm:$0xff]  ;;  %v190_v10 = vld [vmem:[%s1077_s19 + $0x50] sm:$0xff]  ;;  %v191_v11 = vld [vmem:[%s1077_s19 + $0x58] sm:$0xff] }
  0x45   : > { %247 = vst [vmem:[%s1086_s23 + $0x18] sm:$0xff] %v183_v3  ;;  %v192_v12 = vld [vmem:[%s1077_s19 + $0x60] sm:$0xff]  ;;  %v193_v13 = vld [vmem:[%s1077_s19 + $0x68] sm:$0xff]  ;;  %v194_v14 = vld [vmem:[%s1077_s19 + $0x70] sm:$0xff] }
  0x46   : > { %248 = vst [vmem:[%s1086_s23 + $0x20] sm:$0xff] %v184_v4  ;;  %v195_v15 = vld [vmem:[%s1077_s19 + $0x78] sm:$0xff]  ;;  %v196_v16 = vld [vmem:[%s1077_s19 + $0x80] sm:$0xff]  ;;  %v197_v17 = vld [vmem:[%s1077_s19 + $0x88] sm:$0xff] }
  0x47   : > { %249 = vst [vmem:[%s1086_s23 + $0x28] sm:$0xff] %v185_v5  ;;  %v198_v18 = vld [vmem:[%s1077_s19 + $0x90] sm:$0xff]  ;;  %v199_v19 = vld [vmem:[%s1077_s19 + $0x98] sm:$0xff]  ;;  %v200_v20 = vld [vmem:[%s1077_s19 + $0xa0] sm:$0xff] }
  0x48   : > { %250 = vst [vmem:[%s1086_s23 + $0x30] sm:$0xff] %v186_v6  ;;  %v201_v21 = vld [vmem:[%s1077_s19 + $0xa8] sm:$0xff]  ;;  %v202_v22 = vld [vmem:[%s1077_s19 + $0xb0] sm:$0xff]  ;;  %v203_v23 = vld [vmem:[%s1077_s19 + $0xb8] sm:$0xff] }
  0x49   : > { %251 = vst [vmem:[%s1086_s23 + $0x38] sm:$0xff] %v187_v7  ;;  %v204_v24 = vld [vmem:[%s1077_s19 + $0xc0] sm:$0xff]  ;;  %v205_v25 = vld [vmem:[%s1077_s19 + $0xc8] sm:$0xff]  ;;  %v206_v26 = vld [vmem:[%s1077_s19 + $0xd0] sm:$0xff] }
  0x4a   : > { %252 = vst [vmem:[%s1086_s23 + $0x40] sm:$0xff] %v188_v8  ;;  %v207_v27 = vld [vmem:[%s1077_s19 + $0xd8] sm:$0xff]  ;;  %v208_v28 = vld [vmem:[%s1077_s19 + $0xe0] sm:$0xff]  ;;  %v209_v29 = vld [vmem:[%s1077_s19 + $0xe8] sm:$0xff] }
  0x4b   : > { %253 = vst [vmem:[%s1086_s23 + $0x48] sm:$0xff] %v189_v9  ;;  %v210_v30 = vld [vmem:[%s1077_s19 + $0xf0] sm:$0xff]  ;;  %v211_v31 = vld [vmem:[%s1077_s19 + $0xf8] sm:$0xff]  ;;  %v212_v32 = vld [vmem:[%s1077_s19 + $0x100] sm:$0xff] }
  0x4c   : > { %254 = vst [vmem:[%s1086_s23 + $0x50] sm:$0xff] %v190_v10  ;;  %v213_v33 = vld [vmem:[%s1077_s19 + $0x108] sm:$0xff]  ;;  %v214_v34 = vld [vmem:[%s1077_s19 + $0x110] sm:$0xff]  ;;  %v215_v35 = vld [vmem:[%s1077_s19 + $0x118] sm:$0xff] }
  0x4d   : > { %255 = vst [vmem:[%s1086_s23 + $0x58] sm:$0xff] %v191_v11  ;;  %v216_v36 = vld [vmem:[%s1077_s19 + $0x120] sm:$0xff]  ;;  %v217_v37 = vld [vmem:[%s1077_s19 + $0x128] sm:$0xff]  ;;  %v218_v38 = vld [vmem:[%s1077_s19 + $0x130] sm:$0xff] }
  0x4e   : > { %256 = vst [vmem:[%s1086_s23 + $0x60] sm:$0xff] %v192_v12  ;;  %v219_v39 = vld [vmem:[%s1077_s19 + $0x138] sm:$0xff]  ;;  %v220_v40 = vld [vmem:[%s1077_s19 + $0x140] sm:$0xff]  ;;  %v221_v41 = vld [vmem:[%s1077_s19 + $0x148] sm:$0xff] }
  0x4f   : > { %257 = vst [vmem:[%s1086_s23 + $0x68] sm:$0xff] %v193_v13  ;;  %v222_v42 = vld [vmem:[%s1077_s19 + $0x150] sm:$0xff]  ;;  %v223_v43 = vld [vmem:[%s1077_s19 + $0x158] sm:$0xff]  ;;  %v224_v44 = vld [vmem:[%s1077_s19 + $0x160] sm:$0xff] }
  0x50   : > { %258 = vst [vmem:[%s1086_s23 + $0x70] sm:$0xff] %v194_v14  ;;  %v225_v45 = vld [vmem:[%s1077_s19 + $0x168] sm:$0xff]  ;;  %v226_v46 = vld [vmem:[%s1077_s19 + $0x170] sm:$0xff]  ;;  %v227_v47 = vld [vmem:[%s1077_s19 + $0x178] sm:$0xff] }
  0x51   : > { %259 = vst [vmem:[%s1086_s23 + $0x78] sm:$0xff] %v195_v15  ;;  %v228_v48 = vld [vmem:[%s1077_s19 + $0x180] sm:$0xff]  ;;  %v229_v49 = vld [vmem:[%s1077_s19 + $0x188] sm:$0xff]  ;;  %v230_v50 = vld [vmem:[%s1077_s19 + $0x190] sm:$0xff] }
  0x52   : > { %260 = vst [vmem:[%s1086_s23 + $0x80] sm:$0xff] %v196_v16  ;;  %v231_v51 = vld [vmem:[%s1077_s19 + $0x198] sm:$0xff]  ;;  %v232_v52 = vld [vmem:[%s1077_s19 + $0x1a0] sm:$0xff]  ;;  %v233_v53 = vld [vmem:[%s1077_s19 + $0x1a8] sm:$0xff] }
  0x53   : > { %261 = vst [vmem:[%s1086_s23 + $0x88] sm:$0xff] %v197_v17  ;;  %v234_v54 = vld [vmem:[%s1077_s19 + $0x1b0] sm:$0xff]  ;;  %v235_v55 = vld [vmem:[%s1077_s19 + $0x1b8] sm:$0xff]  ;;  %v236_v56 = vld [vmem:[%s1077_s19 + $0x1c0] sm:$0xff] }
  0x54   : > { %262 = vst [vmem:[%s1086_s23 + $0x90] sm:$0xff] %v198_v18  ;;  %v237_v57 = vld [vmem:[%s1077_s19 + $0x1c8] sm:$0xff]  ;;  %v238_v58 = vld [vmem:[%s1077_s19 + $0x1d0] sm:$0xff]  ;;  %v239_v59 = vld [vmem:[%s1077_s19 + $0x1d8] sm:$0xff] }
  0x55   : > { %263 = vst [vmem:[%s1086_s23 + $0x98] sm:$0xff] %v199_v19  ;;  %v240_v60 = vld [vmem:[%s1077_s19 + $0x1e0] sm:$0xff]  ;;  %v241_v61 = vld [vmem:[%s1077_s19 + $0x1e8] sm:$0xff]  ;;  %v242_v62 = vld [vmem:[%s1077_s19 + $0x1f0] sm:$0xff] }
  0x56   : > { %264 = vst [vmem:[%s1086_s23 + $0xa0] sm:$0xff] %v200_v20  ;;  %v243_v63 = vld [vmem:[%s1077_s19 + $0x1f8] sm:$0xff] }
  0x57   : > { %265 = vst [vmem:[%s1086_s23 + $0xa8] sm:$0xff] %v201_v21 }
  0x58   : > { %266 = vst [vmem:[%s1086_s23 + $0xb0] sm:$0xff] %v202_v22 }
  0x59   : > { %267 = vst [vmem:[%s1086_s23 + $0xb8] sm:$0xff] %v203_v23 }
  0x5a   : > { %268 = vst [vmem:[%s1086_s23 + $0xc0] sm:$0xff] %v204_v24 }
  0x5b   : > { %269 = vst [vmem:[%s1086_s23 + $0xc8] sm:$0xff] %v205_v25 }
  0x5c   : > { %270 = vst [vmem:[%s1086_s23 + $0xd0] sm:$0xff] %v206_v26 }
  0x5d   : > { %271 = vst [vmem:[%s1086_s23 + $0xd8] sm:$0xff] %v207_v27 }
  0x5e   : > { %272 = vst [vmem:[%s1086_s23 + $0xe0] sm:$0xff] %v208_v28 }
  0x5f   : > { %273 = vst [vmem:[%s1086_s23 + $0xe8] sm:$0xff] %v209_v29 }
  0x60   : > { %274 = vst [vmem:[%s1086_s23 + $0xf0] sm:$0xff] %v210_v30 }
  0x61   : > { %275 = vst [vmem:[%s1086_s23 + $0xf8] sm:$0xff] %v211_v31 }
  0x62   : > { %276 = vst [vmem:[%s1086_s23 + $0x100] sm:$0xff] %v212_v32 }
  0x63   : > { %277 = vst [vmem:[%s1086_s23 + $0x108] sm:$0xff] %v213_v33 }
  0x64   : > { %278 = vst [vmem:[%s1086_s23 + $0x110] sm:$0xff] %v214_v34 }
  0x65   : > { %279 = vst [vmem:[%s1086_s23 + $0x118] sm:$0xff] %v215_v35 }
  0x66   : > { %280 = vst [vmem:[%s1086_s23 + $0x120] sm:$0xff] %v216_v36 }
  0x67   : > { %281 = vst [vmem:[%s1086_s23 + $0x128] sm:$0xff] %v217_v37 }
  0x68   : > { %282 = vst [vmem:[%s1086_s23 + $0x130] sm:$0xff] %v218_v38 }
  0x69   : > { %283 = vst [vmem:[%s1086_s23 + $0x138] sm:$0xff] %v219_v39 }
  0x6a   : > { %284 = vst [vmem:[%s1086_s23 + $0x140] sm:$0xff] %v220_v40 }
  0x6b   : > { %285 = vst [vmem:[%s1086_s23 + $0x148] sm:$0xff] %v221_v41 }
  0x6c   : > { %286 = vst [vmem:[%s1086_s23 + $0x150] sm:$0xff] %v222_v42 }
  0x6d   : > { %287 = vst [vmem:[%s1086_s23 + $0x158] sm:$0xff] %v223_v43 }
  0x6e   : > { %288 = vst [vmem:[%s1086_s23 + $0x160] sm:$0xff] %v224_v44 }
  0x6f   : > { %289 = vst [vmem:[%s1086_s23 + $0x168] sm:$0xff] %v225_v45 }
  0x70   : > { %290 = vst [vmem:[%s1086_s23 + $0x170] sm:$0xff] %v226_v46 }
  0x71   : > { %291 = vst [vmem:[%s1086_s23 + $0x178] sm:$0xff] %v227_v47 }
  0x72   : > { %292 = vst [vmem:[%s1086_s23 + $0x180] sm:$0xff] %v228_v48 }
  0x73   : > { %293 = vst [vmem:[%s1086_s23 + $0x188] sm:$0xff] %v229_v49 }
  0x74   : > { %294 = vst [vmem:[%s1086_s23 + $0x190] sm:$0xff] %v230_v50 }
  0x75   : > { %295 = vst [vmem:[%s1086_s23 + $0x198] sm:$0xff] %v231_v51 }
  0x76   : > { %296 = vst [vmem:[%s1086_s23 + $0x1a0] sm:$0xff] %v232_v52 }
  0x77   : > { %297 = vst [vmem:[%s1086_s23 + $0x1a8] sm:$0xff] %v233_v53 }
  0x78   : > { %298 = vst [vmem:[%s1086_s23 + $0x1b0] sm:$0xff] %v234_v54 }
  0x79   : > { %299 = vst [vmem:[%s1086_s23 + $0x1b8] sm:$0xff] %v235_v55 }
  0x7a   : > { %300 = vst [vmem:[%s1086_s23 + $0x1c0] sm:$0xff] %v236_v56 }
  0x7b   : > { %301 = vst [vmem:[%s1086_s23 + $0x1c8] sm:$0xff] %v237_v57 }
  0x7c   : > { %302 = vst [vmem:[%s1086_s23 + $0x1d0] sm:$0xff] %v238_v58 }
  0x7d   : > { %303 = vst [vmem:[%s1086_s23 + $0x1d8] sm:$0xff] %v239_v59 }
  0x7e   : > { %304 = vst [vmem:[%s1086_s23 + $0x1e0] sm:$0xff] %v240_v60 }
  0x7f   : > { %305 = vst [vmem:[%s1086_s23 + $0x1e8] sm:$0xff] %v241_v61 }
  0x80   : > { %306 = vst [vmem:[%s1086_s23 + $0x1f0] sm:$0xff] %v242_v62 }
  0x81   : > { %307 = vst [vmem:[%s1086_s23 + $0x1f8] sm:$0xff] %v243_v63 }
  0x82 PF: > { %p690_p9 = scmp.lt.s32.totalorder %s917_s12, 1 }
  0x84   : > { %311 = sbr.rel (%p690_p9) target bundleno = 552 (0x228), region = 36 }
  0x89   : > { %v312_v0 = vld [vmem:[%s1077_s19] sm:$0xff]  ;;  %v314_v1 = vld [vmem:[%s1077_s19 + $0x10] sm:$0xff]  ;;  %v313_v12 = vld [vmem:[%s1077_s19 + $0x8] sm:$0xff] }
  0x8a   : > { %376 = vxpose.xlu0.b32.start [1/16] %v312_v0, 128  ;;  %v316_v2 = vld [vmem:[%s1077_s19 + $0x20] sm:$0xff]  ;;  %v318_v3 = vld [vmem:[%s1077_s19 + $0x30] sm:$0xff]  ;;  %408 = vxpose.xlu1.b32.start [1/16] %v313_v12, 128  ;;  %v315_v14 = vld [vmem:[%s1077_s19 + $0x18] sm:$0xff] }
  0x8b   : > { %v320_v4 = vld [vmem:[%s1077_s19 + $0x40] sm:$0xff]  ;;  %v322_v5 = vld [vmem:[%s1077_s19 + $0x50] sm:$0xff]  ;;  %v317_v17 = vld [vmem:[%s1077_s19 + $0x28] sm:$0xff] }
  0x8c   : > { %v324_v6 = vld [vmem:[%s1077_s19 + $0x60] sm:$0xff]  ;;  %v326_v7 = vld [vmem:[%s1077_s19 + $0x70] sm:$0xff]  ;;  %v319_v20 = vld [vmem:[%s1077_s19 + $0x38] sm:$0xff] }
  0x8d   : > { %v328_v8 = vld [vmem:[%s1077_s19 + $0x80] sm:$0xff]  ;;  %v330_v9 = vld [vmem:[%s1077_s19 + $0x90] sm:$0xff]  ;;  %v321_v23 = vld [vmem:[%s1077_s19 + $0x48] sm:$0xff] }
  0x8e   : > { %v332_v10 = vld [vmem:[%s1077_s19 + $0xa0] sm:$0xff]  ;;  %v334_v11 = vld [vmem:[%s1077_s19 + $0xb0] sm:$0xff]  ;;  %v345_v24 = vld [vmem:[%s1077_s19 + $0x108] sm:$0xff] }
  0x8f   : > { %v336_v13 = vld [vmem:[%s1077_s19 + $0xc0] sm:$0xff]  ;;  %v338_v15 = vld [vmem:[%s1077_s19 + $0xd0] sm:$0xff]  ;;  %v347_v26 = vld [vmem:[%s1077_s19 + $0x118] sm:$0xff] }
  0x90   : > { %v344_v16 = vld [vmem:[%s1077_s19 + $0x100] sm:$0xff]  ;;  %v346_v19 = vld [vmem:[%s1077_s19 + $0x110] sm:$0xff]  ;;  %v323_v27 = vld [vmem:[%s1077_s19 + $0x58] sm:$0xff] }
  0x91   : > { %440 = vxpose.xlu2.b32.start [1/16] %v344_v16, 128  ;;  %v340_v18 = vld [vmem:[%s1077_s19 + $0xe0] sm:$0xff]  ;;  %v342_v21 = vld [vmem:[%s1077_s19 + $0xf0] sm:$0xff]  ;;  %v349_v29 = vld [vmem:[%s1077_s19 + $0x128] sm:$0xff] }
  0x92   : > { %377 = vxpose.xlu0.b32.cont [2/16] %v314_v1, 128  ;;  %409 = vxpose.xlu1.b32.cont [2/16] %v315_v14, 128  ;;  %v348_v22 = vld [vmem:[%s1077_s19 + $0x120] sm:$0xff]  ;;  %v350_v25 = vld [vmem:[%s1077_s19 + $0x130] sm:$0xff]  ;;  %v325_v30 = vld [vmem:[%s1077_s19 + $0x68] sm:$0xff] }
  0x93   : > { %v352_v28 = vld [vmem:[%s1077_s19 + $0x140] sm:$0xff]  ;;  %v354_v31 = vld [vmem:[%s1077_s19 + $0x150] sm:$0xff]  ;;  %v351_v32 = vld [vmem:[%s1077_s19 + $0x138] sm:$0xff] }
  0x94   : > { %v327_v33 = vld [vmem:[%s1077_s19 + $0x78] sm:$0xff]  ;;  %v356_v34 = vld [vmem:[%s1077_s19 + $0x160] sm:$0xff]  ;;  %v353_v35 = vld [vmem:[%s1077_s19 + $0x148] sm:$0xff] }
  0x95   : > { %v329_v36 = vld [vmem:[%s1077_s19 + $0x88] sm:$0xff]  ;;  %v358_v37 = vld [vmem:[%s1077_s19 + $0x170] sm:$0xff]  ;;  %v355_v39 = vld [vmem:[%s1077_s19 + $0x158] sm:$0xff] }
  0x96   : > { %v331_v40 = vld [vmem:[%s1077_s19 + $0x98] sm:$0xff]  ;;  %v360_v41 = vld [vmem:[%s1077_s19 + $0x180] sm:$0xff]  ;;  %v357_v43 = vld [vmem:[%s1077_s19 + $0x168] sm:$0xff] }
  0x97   : > { %v333_v44 = vld [vmem:[%s1077_s19 + $0xa8] sm:$0xff]  ;;  %v362_v45 = vld [vmem:[%s1077_s19 + $0x190] sm:$0xff]  ;;  %v359_v47 = vld [vmem:[%s1077_s19 + $0x178] sm:$0xff] }
  0x98   : > { %v335_v48 = vld [vmem:[%s1077_s19 + $0xb8] sm:$0xff]  ;;  %v364_v49 = vld [vmem:[%s1077_s19 + $0x1a0] sm:$0xff]  ;;  %v361_v51 = vld [vmem:[%s1077_s19 + $0x188] sm:$0xff] }
  0x99   : > { %441 = vxpose.xlu2.b32.cont [2/16] %v346_v19, 128  ;;  %v337_v52 = vld [vmem:[%s1077_s19 + $0xc8] sm:$0xff]  ;;  %v366_v53 = vld [vmem:[%s1077_s19 + $0x1b0] sm:$0xff]  ;;  %v363_v55 = vld [vmem:[%s1077_s19 + $0x198] sm:$0xff] }
  0x9a   : > { %378 = vxpose.xlu0.b32.cont [3/16] %v316_v2, 128  ;;  %410 = vxpose.xlu1.b32.cont [3/16] %v317_v17, 128  ;;  %v339_v56 = vld [vmem:[%s1077_s19 + $0xd8] sm:$0xff]  ;;  %v368_v57 = vld [vmem:[%s1077_s19 + $0x1c0] sm:$0xff]  ;;  %v365_v59 = vld [vmem:[%s1077_s19 + $0x1a8] sm:$0xff] }
  0x9b   : > { %v341_v60 = vld [vmem:[%s1077_s19 + $0xe8] sm:$0xff]  ;;  %v370_v61 = vld [vmem:[%s1077_s19 + $0x1d0] sm:$0xff]  ;;  %v367_v63 = vld [vmem:[%s1077_s19 + $0x1b8] sm:$0xff] }
  0x9c   : > { %v343_v0 = vld [vmem:[%s1077_s19 + $0xf8] sm:$0xff]  ;;  %v372_v1 = vld [vmem:[%s1077_s19 + $0x1e0] sm:$0xff] }
  0xa1   : > { %442 = vxpose.xlu2.b32.cont [3/16] %v348_v22, 128 }
  0xa2   : > { %379 = vxpose.xlu0.b32.cont [4/16] %v318_v3, 128  ;;  %411 = vxpose.xlu1.b32.cont [4/16] %v319_v20, 128  ;;  %v369_v3 = vld [vmem:[%s1077_s19 + $0x1c8] sm:$0xff] }
  0xa9   : > { %443 = vxpose.xlu2.b32.cont [4/16] %v350_v25, 128 }
  0xaa   : > { %380 = vxpose.xlu0.b32.cont [5/16] %v320_v4, 128  ;;  %412 = vxpose.xlu1.b32.cont [5/16] %v321_v23, 128  ;;  %v374_v4 = vld [vmem:[%s1077_s19 + $0x1f0] sm:$0xff] }
  0xb1   : > { %444 = vxpose.xlu2.b32.cont [5/16] %v352_v28, 128 }
  0xb2   : > { %381 = vxpose.xlu0.b32.cont [6/16] %v322_v5, 128  ;;  %413 = vxpose.xlu1.b32.cont [6/16] %v323_v27, 128 }
  0xb9   : > { %445 = vxpose.xlu2.b32.cont [6/16] %v354_v31, 128 }
  0xba   : > { %382 = vxpose.xlu0.b32.cont [7/16] %v324_v6, 128  ;;  %414 = vxpose.xlu1.b32.cont [7/16] %v325_v30, 128  ;;  %v371_v6 = vld [vmem:[%s1077_s19 + $0x1d8] sm:$0xff] }
  0xc1   : > { %446 = vxpose.xlu2.b32.cont [7/16] %v356_v34, 128 }
  0xc2   : > { %383 = vxpose.xlu0.b32.cont [8/16] %v326_v7, 128  ;;  %415 = vxpose.xlu1.b32.cont [8/16] %v327_v33, 128 }
  0xc9   : > { %447 = vxpose.xlu2.b32.cont [8/16] %v358_v37, 128 }
  0xca   : > { %384 = vxpose.xlu0.b32.cont [9/16] %v328_v8, 128  ;;  %416 = vxpose.xlu1.b32.cont [9/16] %v329_v36, 128  ;;  %v373_v8 = vld [vmem:[%s1077_s19 + $0x1e8] sm:$0xff] }
  0xd1   : > { %448 = vxpose.xlu2.b32.cont [9/16] %v360_v41, 128 }
  0xd2   : > { %385 = vxpose.xlu0.b32.cont [10/16] %v330_v9, 128  ;;  %417 = vxpose.xlu1.b32.cont [10/16] %v331_v40, 128 }
  0xd9   : > { %449 = vxpose.xlu2.b32.cont [10/16] %v362_v45, 128 }
  0xda   : > { %386 = vxpose.xlu0.b32.cont [11/16] %v332_v10, 128  ;;  %418 = vxpose.xlu1.b32.cont [11/16] %v333_v44, 128  ;;  %v375_v10 = vld [vmem:[%s1077_s19 + $0x1f8] sm:$0xff] }
  0xe1   : > { %450 = vxpose.xlu2.b32.cont [11/16] %v364_v49, 128 }
  0xe2   : > { %387 = vxpose.xlu0.b32.cont [12/16] %v334_v11, 128  ;;  %419 = vxpose.xlu1.b32.cont [12/16] %v335_v48, 128 }
  0xe9   : > { %451 = vxpose.xlu2.b32.cont [12/16] %v366_v53, 128 }
  0xea   : > { %388 = vxpose.xlu0.b32.cont [13/16] %v336_v13, 128  ;;  %420 = vxpose.xlu1.b32.cont [13/16] %v337_v52, 128 }
  0xf1   : > { %452 = vxpose.xlu2.b32.cont [13/16] %v368_v57, 128 }
  0xf2   : > { %389 = vxpose.xlu0.b32.cont [14/16] %v338_v15, 128  ;;  %421 = vxpose.xlu1.b32.cont [14/16] %v339_v56, 128 }
  0xf9   : > { %453 = vxpose.xlu2.b32.cont [14/16] %v370_v61, 128 }
  0xfa   : > { %390 = vxpose.xlu0.b32.cont [15/16] %v340_v18, 128  ;;  %422 = vxpose.xlu1.b32.cont [15/16] %v341_v60, 128 }
 0x101   : > { %454 = vxpose.xlu2.b32.cont [15/16] %v372_v1, 128 }
 0x102   : > { %391 = vxpose.xlu0.b32.end [16/16] %v342_v21, 128  ;;  %423 = vxpose.xlu1.b32.end [16/16] %v343_v0, 128 }
 0x109   : > { %455 = vxpose.xlu2.b32.end [16/16] %v374_v4, 128 }
 0x10a   : > { %472 = vxpose.xlu0.b32.start [1/16] %v345_v24, 128 }
 0x112   : > { %473 = vxpose.xlu0.b32.cont [2/16] %v347_v26, 128 }
 0x11a   : > { %474 = vxpose.xlu0.b32.cont [3/16] %v349_v29, 128 }
 0x122   : > { %475 = vxpose.xlu0.b32.cont [4/16] %v351_v32, 128 }
 0x12a   : > { %476 = vxpose.xlu0.b32.cont [5/16] %v353_v35, 128  ;;  %v456_v12 = vpop.trf.xlu2 }
 0x12b   : > { %505 = vst [vmem:[%s1086_s23 + $0x8] sm:$0xff] %v456_v12 }
 0x12e   : > { %v392_v38 = vpop.trf.xlu0  ;;  %v424_v13 = vpop.trf.xlu1 }
 0x12f   : > { %504 = vst [vmem:[%s1086_s23] sm:$0xff] %v392_v38 }
 0x130   : > { %536 = vst [vmem:[%s1086_s23 + $0x100] sm:$0xff] %v424_v13 }
 0x132   : > { %477 = vxpose.xlu0.b32.cont [6/16] %v355_v39, 128  ;;  %v457_v15 = vpop.trf.xlu2 }
 0x133   : > { %507 = vst [vmem:[%s1086_s23 + $0x18] sm:$0xff] %v457_v15 }
 0x136   : > { %v393_v42 = vpop.trf.xlu0  ;;  %v425_v16 = vpop.trf.xlu1 }
 0x137   : > { %506 = vst [vmem:[%s1086_s23 + $0x10] sm:$0xff] %v393_v42 }
 0x138   : > { %538 = vst [vmem:[%s1086_s23 + $0x110] sm:$0xff] %v425_v16 }
 0x13a   : > { %478 = vxpose.xlu0.b32.cont [7/16] %v357_v43, 128  ;;  %v458_v18 = vpop.trf.xlu2 }
 0x13b   : > { %509 = vst [vmem:[%s1086_s23 + $0x28] sm:$0xff] %v458_v18 }
 0x13e   : > { %v394_v46 = vpop.trf.xlu0  ;;  %v426_v19 = vpop.trf.xlu1 }
 0x13f   : > { %508 = vst [vmem:[%s1086_s23 + $0x20] sm:$0xff] %v394_v46 }
 0x140   : > { %540 = vst [vmem:[%s1086_s23 + $0x120] sm:$0xff] %v426_v19 }
 0x142   : > { %479 = vxpose.xlu0.b32.cont [8/16] %v359_v47, 128  ;;  %v459_v21 = vpop.trf.xlu2 }
 0x143   : > { %511 = vst [vmem:[%s1086_s23 + $0x38] sm:$0xff] %v459_v21 }
 0x146   : > { %v395_v50 = vpop.trf.xlu0  ;;  %v427_v22 = vpop.trf.xlu1 }
 0x147   : > { %510 = vst [vmem:[%s1086_s23 + $0x30] sm:$0xff] %v395_v50 }
 0x148   : > { %542 = vst [vmem:[%s1086_s23 + $0x130] sm:$0xff] %v427_v22 }
 0x14a   : > { %480 = vxpose.xlu0.b32.cont [9/16] %v361_v51, 128  ;;  %v460_v24 = vpop.trf.xlu2 }
 0x14b   : > { %513 = vst [vmem:[%s1086_s23 + $0x48] sm:$0xff] %v460_v24 }
 0x14e   : > { %v396_v54 = vpop.trf.xlu0  ;;  %v428_v25 = vpop.trf.xlu1 }
 0x14f   : > { %512 = vst [vmem:[%s1086_s23 + $0x40] sm:$0xff] %v396_v54 }
 0x150   : > { %544 = vst [vmem:[%s1086_s23 + $0x140] sm:$0xff] %v428_v25 }
 0x152   : > { %481 = vxpose.xlu0.b32.cont [10/16] %v363_v55, 128  ;;  %v461_v27 = vpop.trf.xlu2 }
 0x153   : > { %515 = vst [vmem:[%s1086_s23 + $0x58] sm:$0xff] %v461_v27 }
 0x156   : > { %v397_v58 = vpop.trf.xlu0  ;;  %v429_v28 = vpop.trf.xlu1 }
 0x157   : > { %514 = vst [vmem:[%s1086_s23 + $0x50] sm:$0xff] %v397_v58 }
 0x158   : > { %546 = vst [vmem:[%s1086_s23 + $0x150] sm:$0xff] %v429_v28 }
 0x15a   : > { %482 = vxpose.xlu0.b32.cont [11/16] %v365_v59, 128  ;;  %v462_v30 = vpop.trf.xlu2 }
 0x15b   : > { %517 = vst [vmem:[%s1086_s23 + $0x68] sm:$0xff] %v462_v30 }
 0x15e   : > { %v398_v62 = vpop.trf.xlu0  ;;  %v430_v31 = vpop.trf.xlu1 }
 0x15f   : > { %516 = vst [vmem:[%s1086_s23 + $0x60] sm:$0xff] %v398_v62 }
 0x160   : > { %548 = vst [vmem:[%s1086_s23 + $0x160] sm:$0xff] %v430_v31 }
 0x162   : > { %483 = vxpose.xlu0.b32.cont [12/16] %v367_v63, 128  ;;  %v463_v33 = vpop.trf.xlu2 }
 0x163   : > { %519 = vst [vmem:[%s1086_s23 + $0x78] sm:$0xff] %v463_v33 }
 0x166   : > { %v399_v2 = vpop.trf.xlu0  ;;  %v431_v34 = vpop.trf.xlu1 }
 0x167   : > { %518 = vst [vmem:[%s1086_s23 + $0x70] sm:$0xff] %v399_v2 }
 0x168   : > { %550 = vst [vmem:[%s1086_s23 + $0x170] sm:$0xff] %v431_v34 }
 0x16a   : > { %484 = vxpose.xlu0.b32.cont [13/16] %v369_v3, 128  ;;  %v464_v36 = vpop.trf.xlu2 }
 0x16b   : > { %521 = vst [vmem:[%s1086_s23 + $0x88] sm:$0xff] %v464_v36 }
 0x16e   : > { %v400_v5 = vpop.trf.xlu0  ;;  %v432_v37 = vpop.trf.xlu1 }
 0x16f   : > { %520 = vst [vmem:[%s1086_s23 + $0x80] sm:$0xff] %v400_v5 }
 0x170   : > { %552 = vst [vmem:[%s1086_s23 + $0x180] sm:$0xff] %v432_v37 }
 0x172   : > { %485 = vxpose.xlu0.b32.cont [14/16] %v371_v6, 128  ;;  %v465_v39 = vpop.trf.xlu2 }
 0x173   : > { %523 = vst [vmem:[%s1086_s23 + $0x98] sm:$0xff] %v465_v39 }
 0x176   : > { %v401_v7 = vpop.trf.xlu0  ;;  %v433_v40 = vpop.trf.xlu1 }
 0x177   : > { %522 = vst [vmem:[%s1086_s23 + $0x90] sm:$0xff] %v401_v7 }
 0x178   : > { %554 = vst [vmem:[%s1086_s23 + $0x190] sm:$0xff] %v433_v40 }
 0x17a   : > { %486 = vxpose.xlu0.b32.cont [15/16] %v373_v8, 128  ;;  %v466_v42 = vpop.trf.xlu2 }
 0x17b   : > { %525 = vst [vmem:[%s1086_s23 + $0xa8] sm:$0xff] %v466_v42 }
 0x17e   : > { %v402_v9 = vpop.trf.xlu0  ;;  %v434_v43 = vpop.trf.xlu1 }
 0x17f   : > { %524 = vst [vmem:[%s1086_s23 + $0xa0] sm:$0xff] %v402_v9 }
 0x180   : > { %556 = vst [vmem:[%s1086_s23 + $0x1a0] sm:$0xff] %v434_v43 }
 0x182   : > { %487 = vxpose.xlu0.b32.end [16/16] %v375_v10, 128  ;;  %v467_v45 = vpop.trf.xlu2 }
 0x183   : > { %527 = vst [vmem:[%s1086_s23 + $0xb8] sm:$0xff] %v467_v45 }
 0x186   : > { %v403_v11 = vpop.trf.xlu0  ;;  %v435_v46 = vpop.trf.xlu1 }
 0x187   : > { %526 = vst [vmem:[%s1086_s23 + $0xb0] sm:$0xff] %v403_v11 }
 0x188   : > { %558 = vst [vmem:[%s1086_s23 + $0x1b0] sm:$0xff] %v435_v46 }
 0x18a   : > { %v468_v48 = vpop.trf.xlu2 }
 0x18b   : > { %529 = vst [vmem:[%s1086_s23 + $0xc8] sm:$0xff] %v468_v48 }
 0x18e   : > { %v404_v14 = vpop.trf.xlu0  ;;  %v436_v49 = vpop.trf.xlu1 }
 0x18f   : > { %528 = vst [vmem:[%s1086_s23 + $0xc0] sm:$0xff] %v404_v14 }
 0x190   : > { %560 = vst [vmem:[%s1086_s23 + $0x1c0] sm:$0xff] %v436_v49 }
 0x192   : > { %v469_v51 = vpop.trf.xlu2 }
 0x193   : > { %531 = vst [vmem:[%s1086_s23 + $0xd8] sm:$0xff] %v469_v51 }
 0x196   : > { %v405_v17 = vpop.trf.xlu0  ;;  %v437_v52 = vpop.trf.xlu1 }
 0x197   : > { %530 = vst [vmem:[%s1086_s23 + $0xd0] sm:$0xff] %v405_v17 }
 0x198   : > { %562 = vst [vmem:[%s1086_s23 + $0x1d0] sm:$0xff] %v437_v52 }
 0x19a   : > { %v470_v54 = vpop.trf.xlu2 }
 0x19b   : > { %533 = vst [vmem:[%s1086_s23 + $0xe8] sm:$0xff] %v470_v54 }
 0x19e   : > { %v406_v20 = vpop.trf.xlu0  ;;  %v438_v55 = vpop.trf.xlu1 }
 0x19f   : > { %532 = vst [vmem:[%s1086_s23 + $0xe0] sm:$0xff] %v406_v20 }
 0x1a0   : > { %564 = vst [vmem:[%s1086_s23 + $0x1e0] sm:$0xff] %v438_v55 }
 0x1a2   : > { %v471_v57 = vpop.trf.xlu2 }
 0x1a3   : > { %535 = vst [vmem:[%s1086_s23 + $0xf8] sm:$0xff] %v471_v57 }
 0x1a6   : > { %v407_v23 = vpop.trf.xlu0  ;;  %v439_v58 = vpop.trf.xlu1 }
 0x1a7   : > { %534 = vst [vmem:[%s1086_s23 + $0xf0] sm:$0xff] %v407_v23 }
 0x1a8   : > { %566 = vst [vmem:[%s1086_s23 + $0x1f0] sm:$0xff] %v439_v58 }
 0x1ae   : > { %v488_v26 = vpop.trf.xlu0 }
 0x1af   : > { %537 = vst [vmem:[%s1086_s23 + $0x108] sm:$0xff] %v488_v26 }
 0x1b6   : > { %v489_v29 = vpop.trf.xlu0 }
 0x1b7   : > { %539 = vst [vmem:[%s1086_s23 + $0x118] sm:$0xff] %v489_v29 }
 0x1be   : > { %v490_v32 = vpop.trf.xlu0 }
 0x1bf   : > { %541 = vst [vmem:[%s1086_s23 + $0x128] sm:$0xff] %v490_v32 }
 0x1c6   : > { %v491_v35 = vpop.trf.xlu0 }
 0x1c7   : > { %543 = vst [vmem:[%s1086_s23 + $0x138] sm:$0xff] %v491_v35 }
 0x1ce   : > { %v492_v38 = vpop.trf.xlu0 }
 0x1cf   : > { %545 = vst [vmem:[%s1086_s23 + $0x148] sm:$0xff] %v492_v38 }
 0x1d6   : > { %v493_v41 = vpop.trf.xlu0 }
 0x1d7   : > { %547 = vst [vmem:[%s1086_s23 + $0x158] sm:$0xff] %v493_v41 }
 0x1de   : > { %v494_v44 = vpop.trf.xlu0 }
 0x1df   : > { %549 = vst [vmem:[%s1086_s23 + $0x168] sm:$0xff] %v494_v44 }
 0x1e6   : > { %v495_v47 = vpop.trf.xlu0 }
 0x1e7   : > { %551 = vst [vmem:[%s1086_s23 + $0x178] sm:$0xff] %v495_v47 }
 0x1ee   : > { %v496_v50 = vpop.trf.xlu0 }
 0x1ef   : > { %553 = vst [vmem:[%s1086_s23 + $0x188] sm:$0xff] %v496_v50 }
 0x1f6   : > { %v497_v53 = vpop.trf.xlu0 }
 0x1f7   : > { %555 = vst [vmem:[%s1086_s23 + $0x198] sm:$0xff] %v497_v53 }
 0x1fe   : > { %v498_v56 = vpop.trf.xlu0 }
 0x1ff   : > { %557 = vst [vmem:[%s1086_s23 + $0x1a8] sm:$0xff] %v498_v56 }
 0x206   : > { %v499_v59 = vpop.trf.xlu0 }
 0x207   : > { %559 = vst [vmem:[%s1086_s23 + $0x1b8] sm:$0xff] %v499_v59 }
 0x20e   : > { %v500_v60 = vpop.trf.xlu0 }
 0x20f   : > { %561 = vst [vmem:[%s1086_s23 + $0x1c8] sm:$0xff] %v500_v60 }
 0x216   : > { %v501_v61 = vpop.trf.xlu0 }
 0x217   : > { %563 = vst [vmem:[%s1086_s23 + $0x1d8] sm:$0xff] %v501_v61 }
 0x21e   : > { %v502_v62 = vpop.trf.xlu0 }
 0x21f   : > { %565 = vst [vmem:[%s1086_s23 + $0x1e8] sm:$0xff] %v502_v62 }
 0x226   : > { %v503_v63 = vpop.trf.xlu0 }
 0x227   : > { %567 = vst [vmem:[%s1086_s23 + $0x1f8] sm:$0xff] %v503_v63 }
 0x228 PF: > { %s697_s30 = sshll.u32 %s917_s12, 4  ;;  %s584_s20 = sshll.u32 %s1086_s23, 4  ;;  %s585_s20 = int_to_ptr.vmem [resolvable:$true] %s584_s20 }
 0x229   : > { %s583_s15 = scalar_lea.hbm %s1396_s1, %s697_s30  ;;  %s569_s21 = scalar_lea.sflag [#allocation4], %s165_s28 }
 0x22a   : > { %s586_s26 = sshll.u32 %s583_s15, 4  ;;  %s839_s12 = scalar_lea.hbm %s1396_s1, 1024  ;;  %s587_s26 = int_to_ptr.hbm [resolvable:$true] %s586_s26 }
 0x22b   : > { %s833_s22 = sshra.s32 %s587_s26, 4  ;;  %s834_s22 = int_to_ptr.hbm [resolvable:$true] %s833_s22 }
 0x22c   : > { %s835_s4 = scalar_lea.hbm %s834_s22, 512  ;;  %p840_p6 = scmp.lt.s32.totalorder %s834_s22, %s1396_s1 }
 0x22d   : > { %p836_p7 = scmp.ne.s32.totalorder %s834_s22, %s835_s4  ;;  %p841_p0 = scmp.lt.s32.totalorder %s839_s12, %s835_s4 }
 0x22f   : > { %p837_p11 = pnand %p836_p7, %p1033_p13  ;;  %p842_p1 = por %p841_p0, %p840_p6 }
 0x231   : > { %p838_p12 = pneg %p837_p11 }
 0x233   : > { %p843_p3 = pnand %p842_p1, %p838_p12 }
 0x235   : > { %846 = shalt.err (!%p843_p3)
}
 0x236   : > { %s929_s19 = smov 256   ;;  %s930_s28 = smov 512  }
 0x237   : > { %s931_s17 = smov 16  }
 0x238   : > { %700 = dma.vmem_to_hbm [thread:$0]  (%p1033_p13), %s585_s20, 8192, %s587_s26, %s569_s21, %s929_s19, %s930_s28, %s931_s17  }
 0x239 PF: > { %s601_s23 = sand.u32 1, %s893_s6   ;;  %p707_p8 = pnand %p679_p2, %p1044_p4 }
 0x23a   : > { %s602_s30 = scalar_lea.sflag [#allocation4], %s601_s23 }
 0x23b   : > { %p708_p10 = pneg %p707_p8 }
 0x23d   : > { %888 = dma.done.wait (%p708_p10), %s602_s30, 8192  }
 0x23e   : > { %890 = vsyncadd (%p708_p10), %s602_s30, 4294959104  ;;  %s17_s14 = sadd.s32 1, %s925_s14   ;;  %s1404_s3 = sld [smem:[#allocation8_spill]] }
 0x23f   : > { %p14_p5 = scmp.ge.s32.totalorder %s17_s14, 4   ;;  %s1405_s6 = smov %s897_s7 }
 0x240   : > { %s1406_s7 = smov %s901_s8  ;;  %s1407_s8 = smov %s1031_s2 }
 0x241   : > { %s1408_s9 = smov %s909_s10  ;;  %s1409_s10 = smov %s913_s11 }
 0x242   : > { %s1410_s11 = smov %s1020_s29  ;;  %s1411_s12 = smov %s921_s13 }
 0x243   :  { %16 = sbr.rel (!%p14_p5) target bundleno = 8 (0x8), region = 77 }
 0x244   : > { %s1412_s13 = smov %s1404_s3 }
 0x248   :  { %608 = vsyncpa [#allocation3], 1 }
 0x249   :  { %610 = vsyncpa [#allocation3 + $0x1], 1 }
 0x24a   :  { %611 = vsyncpa [#allocation4], 1 }
 0x24b   :  { %613 = vsyncpa [#allocation4 + $0x1], 1 }

</bundles_post_ra>
